<compile_context>
chip_gen: v5e
topology: v5e:2x2
jax: 0.10.0
libtpu: 0.0.40
codegen_flags: <defaults>
</compile_context>

<pallas_src>
import functools

import jax
import jax.numpy as jnp
from jax.experimental import pallas as pl
from jax.experimental.pallas import tpu as pltpu


# ---------------------------------------------------------------------------
# Path A (default): direct HBM -> HBM DMA concat.
# ---------------------------------------------------------------------------
def _merge_dma_kernel(x1_hbm, x2_hbm, o_hbm, sem):
    """Per batch element: DMA x1[n] -> out[n, 0], x2[n] -> out[n, 1]."""
    n = pl.program_id(0)
    cp1 = pltpu.make_async_copy(x1_hbm.at[n], o_hbm.at[n, 0], sem.at[0])
    cp2 = pltpu.make_async_copy(x2_hbm.at[n], o_hbm.at[n, 1], sem.at[1])
    cp1.start()
    cp2.start()
    cp1.wait()
    cp2.wait()


def _merge_via_dma(x1f, x2f):
    N, c_half, HW = x1f.shape
    return pl.pallas_call(
        _merge_dma_kernel,
        out_shape=jax.ShapeDtypeStruct((N, 2, c_half, HW), x1f.dtype),
        grid_spec=pltpu.PrefetchScalarGridSpec(
            num_scalar_prefetch=0,
            grid=(N,),
            in_specs=[pl.BlockSpec(memory_space=pl.ANY),
                      pl.BlockSpec(memory_space=pl.ANY)],
            out_specs=pl.BlockSpec(memory_space=pl.ANY),
            scratch_shapes=[pltpu.SemaphoreType.DMA((2,))],
        ),
        compiler_params=pltpu.CompilerParams(
            dimension_semantics=("parallel",),
        ),
    )(x1f, x2f)


# ---------------------------------------------------------------------------
# Path B: tiled VMEM copy (collapsed "half" axis), kept for generality.
# ---------------------------------------------------------------------------
def _merge_tiled_kernel(x1_ref, x2_ref, o_ref):
    """o_ref block is (2, tc, HW): write both halves of this channel tile."""
    o_ref[0] = x1_ref[...]
    o_ref[1] = x2_ref[...]


def _sublane_multiple(dtype):
    """Minimum sublane tile: 8 for f32, 16 for bf16, 32 for int8/fp8."""
    itemsize = dtype.itemsize
    return 8 * max(1, 4 // max(1, itemsize))


def _pick_channel_tile(c_half, hw, dtype):
    """Largest aligned channel tile keeping the buffered footprint ~<=24 MiB.

    Footprint per step = x1 + x2 + out(=2x) tiles, double-buffered:
        8 * tc * hw * itemsize  bytes.
    """
    itemsize = dtype.itemsize
    budget_total = 24 * 1024 * 1024
    rows = budget_total // (8 * max(1, hw * itemsize))
    if rows >= c_half:
        return c_half                      # full-extent block: always legal
    align = _sublane_multiple(dtype)
    return max(align, (rows // align) * align)


def _normalize_channel_tile(channel_tile, c_half, hw, dtype):
    if channel_tile is None:
        channel_tile = _pick_channel_tile(c_half, hw, dtype)
    if channel_tile >= c_half:
        return c_half
    align = _sublane_multiple(dtype)
    tc = max(align, (channel_tile // align) * align)
    return min(tc, c_half)                 # == c_half -> full extent (legal)


def _merge_via_tiles(x1f, x2f, channel_tile):
    N, c_half, HW = x1f.shape
    tc = _normalize_channel_tile(channel_tile, c_half, HW, x1f.dtype)
    nt = (c_half + tc - 1) // tc

    x1_spec = pl.BlockSpec((None, tc, HW), lambda n, c: (n, c, 0))
    x2_spec = pl.BlockSpec((None, tc, HW), lambda n, c: (n, c, 0))
    out_spec = pl.BlockSpec((None, 2, tc, HW), lambda n, c: (n, 0, c, 0))

    return pl.pallas_call(
        _merge_tiled_kernel,
        out_shape=jax.ShapeDtypeStruct((N, 2, c_half, HW), x1f.dtype),
        grid_spec=pltpu.PrefetchScalarGridSpec(
            num_scalar_prefetch=0,
            grid=(N, nt),
            in_specs=[x1_spec, x2_spec],
            out_specs=out_spec,
        ),
        compiler_params=pltpu.CompilerParams(
            dimension_semantics=("parallel", "parallel"),
            vmem_limit_bytes=48 * 1024 * 1024,
        ),
    )(x1f, x2f)


# ---------------------------------------------------------------------------
# Public wrapper: IRevMergeBlock.forward
# ---------------------------------------------------------------------------
@functools.partial(jax.jit, static_argnames=("use_dma", "channel_tile"))
def irev_merge_block(x1, x2, use_dma=True, channel_tile=None):
    """Forward of IRevMergeBlock: returns (concat((x1, x2), axis=1), same)."""
    assert x1.shape == x2.shape and x1.dtype == x2.dtype
    N, c_half, H, W = x1.shape
    HW = H * W

    # Free reshapes of contiguous NCHW tensors -> lane-dense last dim.
    x1f = x1.reshape(N, c_half, HW)
    x2f = x2.reshape(N, c_half, HW)

    if use_dma:
        out = _merge_via_dma(x1f, x2f)
    else:
        out = _merge_via_tiles(x1f, x2f, channel_tile)

    x = out.reshape(N, 2 * c_half, H, W)   # free reshape back to NCHW
    return x, x


def irev_merge_block_inverse(x, _=None):
    """Inverse: torch.chunk(x, 2, dim=1) -- plain JAX glue (XLA fuses it)."""
    x1, x2 = jnp.split(x, 2, axis=1)
    return x1, x2


if __name__ == "__main__":
    key = jax.random.PRNGKey(0)
    k1, k2, k3, k4 = jax.random.split(key, 4)

    # Small shapes consistent with the module: two NCHW halves, even channels.
    x1 = jax.random.normal(k1, (2, 2, 16, 16), dtype=jnp.float32)
    x2 = jax.random.normal(k2, (2, 2, 16, 16), dtype=jnp.float32)
    ref = jnp.concatenate((x1, x2), axis=1)

    # Default path: direct HBM->HBM DMA concat.
    y, y_dup = irev_merge_block(x1, x2)
    jax.block_until_ready((y, y_dup))
    assert y.shape == (2, 4, 16, 16)
    assert jnp.array_equal(y, ref) and jnp.array_equal(y_dup, ref)

    # Round-trip through the inverse (chunk along channels).
    r1, r2 = irev_merge_block_inverse(y)
    assert jnp.array_equal(r1, x1) and jnp.array_equal(r2, x2)

    # Tiled VMEM path: explicit tile of 8, non-divisible channel count
    # (20 % 8 != 0) -> exercises the partial-last-block masking.
    a1 = jax.random.normal(k3, (2, 20, 16, 8), dtype=jnp.float32)
    a2 = jax.random.normal(k4, (2, 20, 16, 8), dtype=jnp.float32)
    yb, yb_dup = irev_merge_block(a1, a2, use_dma=False, channel_tile=8)
    jax.block_until_ready((yb, yb_dup))
    refb = jnp.concatenate((a1, a2), axis=1)
    assert jnp.array_equal(yb, refb) and jnp.array_equal(yb_dup, refb)

    print("KERNEL_OK")
</pallas_src>

<mosaic_0001>
module attributes {stable_mosaic.version = 11 : i64} {
  func.func @_merge_dma_kernel(%arg0: i32, %arg1: memref<2x2x256xf32, #tpu.memory_space<any>>, %arg2: memref<2x2x256xf32, #tpu.memory_space<any>>, %arg3: memref<2x2x2x256xf32, #tpu.memory_space<any>>, %arg4: memref<2x!tpu.dma_semaphore, #tpu.memory_space<semaphore_mem>>) attributes {dimension_semantics = [#tpu.dimension_semantics<parallel>], iteration_bounds = array<i64: 2>, scalar_prefetch = 0 : i64, scratch_operands = 1 : i64, tpu.core_type = #tpu.core_type<tc>, window_params = [{}, {}, {}]} {
    %c0_i32 = arith.constant 0 : i32
    %c0_i32_0 = arith.constant 0 : i32
    %c0_i32_1 = arith.constant 0 : i32
    %c0_i32_2 = arith.constant 0 : i32
    %0 = tpu.memref_slice %arg1[%arg0, %c0_i32_1, %c0_i32_2] : memref<2x2x256xf32, #tpu.memory_space<any>> -> memref<1x2x256xf32, #tpu.memory_space<any>>
    %1 = tpu.memref_squeeze %0 : memref<1x2x256xf32, #tpu.memory_space<any>> -> memref<2x256xf32, #tpu.memory_space<any>>
    %c0_i32_3 = arith.constant 0 : i32
    %c0_i32_4 = arith.constant 0 : i32
    %2 = tpu.memref_slice %arg3[%arg0, %c0_i32, %c0_i32_3, %c0_i32_4] : memref<2x2x2x256xf32, #tpu.memory_space<any>> -> memref<1x1x2x256xf32, #tpu.memory_space<any>>
    %3 = tpu.memref_squeeze %2 : memref<1x1x2x256xf32, #tpu.memory_space<any>> -> memref<2x256xf32, #tpu.memory_space<any>>
    %4 = tpu.memref_slice %arg4[%c0_i32_0] : memref<2x!tpu.dma_semaphore, #tpu.memory_space<semaphore_mem>> -> memref<1x!tpu.dma_semaphore, #tpu.memory_space<semaphore_mem>>
    %5 = tpu.memref_squeeze %4 : memref<1x!tpu.dma_semaphore, #tpu.memory_space<semaphore_mem>> -> memref<!tpu.dma_semaphore, #tpu.memory_space<semaphore_mem>>
    tpu.enqueue_dma source(%1 : memref<2x256xf32, #tpu.memory_space<any>>) target(%3 : memref<2x256xf32, #tpu.memory_space<any>>) target_semaphore(%5 : memref<!tpu.dma_semaphore, #tpu.memory_space<semaphore_mem>>)
    %c1_i32 = arith.constant 1 : i32
    %c1_i32_5 = arith.constant 1 : i32
    %c0_i32_6 = arith.constant 0 : i32
    %c0_i32_7 = arith.constant 0 : i32
    %6 = tpu.memref_slice %arg2[%arg0, %c0_i32_6, %c0_i32_7] : memref<2x2x256xf32, #tpu.memory_space<any>> -> memref<1x2x256xf32, #tpu.memory_space<any>>
    %7 = tpu.memref_squeeze %6 : memref<1x2x256xf32, #tpu.memory_space<any>> -> memref<2x256xf32, #tpu.memory_space<any>>
    %c0_i32_8 = arith.constant 0 : i32
    %c0_i32_9 = arith.constant 0 : i32
    %8 = tpu.memref_slice %arg3[%arg0, %c1_i32, %c0_i32_8, %c0_i32_9] : memref<2x2x2x256xf32, #tpu.memory_space<any>> -> memref<1x1x2x256xf32, #tpu.memory_space<any>>
    %9 = tpu.memref_squeeze %8 : memref<1x1x2x256xf32, #tpu.memory_space<any>> -> memref<2x256xf32, #tpu.memory_space<any>>
    %10 = tpu.memref_slice %arg4[%c1_i32_5] : memref<2x!tpu.dma_semaphore, #tpu.memory_space<semaphore_mem>> -> memref<1x!tpu.dma_semaphore, #tpu.memory_space<semaphore_mem>>
    %11 = tpu.memref_squeeze %10 : memref<1x!tpu.dma_semaphore, #tpu.memory_space<semaphore_mem>> -> memref<!tpu.dma_semaphore, #tpu.memory_space<semaphore_mem>>
    tpu.enqueue_dma source(%7 : memref<2x256xf32, #tpu.memory_space<any>>) target(%9 : memref<2x256xf32, #tpu.memory_space<any>>) target_semaphore(%11 : memref<!tpu.dma_semaphore, #tpu.memory_space<semaphore_mem>>)
    %c0_i32_10 = arith.constant 0 : i32
    %c0_i32_11 = arith.constant 0 : i32
    %c0_i32_12 = arith.constant 0 : i32
    %c0_i32_13 = arith.constant 0 : i32
    %12 = tpu.memref_slice %arg1[%arg0, %c0_i32_12, %c0_i32_13] : memref<2x2x256xf32, #tpu.memory_space<any>> -> memref<1x2x256xf32, #tpu.memory_space<any>>
    %13 = tpu.memref_squeeze %12 : memref<1x2x256xf32, #tpu.memory_space<any>> -> memref<2x256xf32, #tpu.memory_space<any>>
    %c0_i32_14 = arith.constant 0 : i32
    %c0_i32_15 = arith.constant 0 : i32
    %14 = tpu.memref_slice %arg3[%arg0, %c0_i32_10, %c0_i32_14, %c0_i32_15] : memref<2x2x2x256xf32, #tpu.memory_space<any>> -> memref<1x1x2x256xf32, #tpu.memory_space<any>>
    %15 = tpu.memref_squeeze %14 : memref<1x1x2x256xf32, #tpu.memory_space<any>> -> memref<2x256xf32, #tpu.memory_space<any>>
    %16 = tpu.memref_slice %arg4[%c0_i32_11] : memref<2x!tpu.dma_semaphore, #tpu.memory_space<semaphore_mem>> -> memref<1x!tpu.dma_semaphore, #tpu.memory_space<semaphore_mem>>
    %17 = tpu.memref_squeeze %16 : memref<1x!tpu.dma_semaphore, #tpu.memory_space<semaphore_mem>> -> memref<!tpu.dma_semaphore, #tpu.memory_space<semaphore_mem>>
    tpu.wait_dma2 semaphore(%17 : memref<!tpu.dma_semaphore, #tpu.memory_space<semaphore_mem>>) src(%13 : memref<2x256xf32, #tpu.memory_space<any>>) dst(%15 : memref<2x256xf32, #tpu.memory_space<any>>)
    %c1_i32_16 = arith.constant 1 : i32
    %c1_i32_17 = arith.constant 1 : i32
    %c0_i32_18 = arith.constant 0 : i32
    %c0_i32_19 = arith.constant 0 : i32
    %18 = tpu.memref_slice %arg2[%arg0, %c0_i32_18, %c0_i32_19] : memref<2x2x256xf32, #tpu.memory_space<any>> -> memref<1x2x256xf32, #tpu.memory_space<any>>
    %19 = tpu.memref_squeeze %18 : memref<1x2x256xf32, #tpu.memory_space<any>> -> memref<2x256xf32, #tpu.memory_space<any>>
    %c0_i32_20 = arith.constant 0 : i32
    %c0_i32_21 = arith.constant 0 : i32
    %20 = tpu.memref_slice %arg3[%arg0, %c1_i32_16, %c0_i32_20, %c0_i32_21] : memref<2x2x2x256xf32, #tpu.memory_space<any>> -> memref<1x1x2x256xf32, #tpu.memory_space<any>>
    %21 = tpu.memref_squeeze %20 : memref<1x1x2x256xf32, #tpu.memory_space<any>> -> memref<2x256xf32, #tpu.memory_space<any>>
    %22 = tpu.memref_slice %arg4[%c1_i32_17] : memref<2x!tpu.dma_semaphore, #tpu.memory_space<semaphore_mem>> -> memref<1x!tpu.dma_semaphore, #tpu.memory_space<semaphore_mem>>
    %23 = tpu.memref_squeeze %22 : memref<1x!tpu.dma_semaphore, #tpu.memory_space<semaphore_mem>> -> memref<!tpu.dma_semaphore, #tpu.memory_space<semaphore_mem>>
    tpu.wait_dma2 semaphore(%23 : memref<!tpu.dma_semaphore, #tpu.memory_space<semaphore_mem>>) src(%19 : memref<2x256xf32, #tpu.memory_space<any>>) dst(%21 : memref<2x256xf32, #tpu.memory_space<any>>)
    return
  }
}

</mosaic_0001>

<bundles_post_ra>
// kernel: irev_merge_block.1
= control target key start
LH: loop header
LB: loop body
LE: loop exit
PB: predicated region body
PF: predicated region fallthrough
CT: control target
= control target key end

     0   :  { %s166_s9 = smov 0   ;;  %s194_s0 = inlined_call_operand.vmem [shape: f32[2,2,256], index: 0, kind: input, shape index: {}]   ;;  %s195_s1 = inlined_call_operand.vmem [shape: f32[2,2,256], index: 1, kind: input, shape index: {}]   ;;  %s196_s2 = inlined_call_operand.vmem [shape: f32[2,2,2,256], index: 2, kind: output, shape index: {}]  }
   0x1 LB: > { %s146_s10 = sshll.u32 %s168_s9, 2  ;;  %s147_s11 = sshll.u32 %s168_s9, 3  ;;  %s168_s9 = sphi %s166_s9, %s12_s9  }
   0x2   : > { %s16_s14 = scalar_lea.vmem %s194_s0, %s146_s10  ;;  %s19_s17 = scalar_lea.vmem %s196_s2, %s147_s11 }
   0x3   : > { %v34_v0 = vld [vmem:[%s16_s14] sm:$0xf] }
   0x4   : > { %35 = vst [vmem:[%s19_s17] sm:$0xf] %v34_v0 }
   0x5   : > { %53 = vsyncadd [#allocation2], 64  ;;  %s55_s20 = scalar_lea.vmem %s195_s1, %s146_s10 }
   0x6   : > { %v74_v1 = vld [vmem:[%s55_s20] sm:$0xf] }
   0x7   : > { %143 = vst [vmem:[%s19_s17 + $0x4] sm:$0xf] %v74_v1 }
   0x8   : > { %93 = vsyncadd [#allocation2 + $0x1], 64 }
   0x9   : > { %162 = dma.done.wait [#allocation2], 64 }
   0xa   : > { %163 = vsyncadd [#allocation2], 4294967232 }
   0xb   : > { %164 = dma.done.wait [#allocation2 + $0x1], 64 }
   0xc   : > { %165 = vsyncadd [#allocation2 + $0x1], 4294967232  ;;  %s12_s9 = sadd.s32 1, %s168_s9  }
   0xd   : > { %p9_p0 = scmp.ge.s32.totalorder %s12_s9, 2  }
   0xf   :  { %11 = sbr.rel (!%p9_p0) target bundleno = 1 (0x1), region = 93 }
  0x14   :  { %100 = vsyncmov [#allocation2] }
  0x17   :  { %s101_s21 = vpop.sfrf %100 }
  0x18   :  { %p144_p1 = scmp.ne.s32.totalorder %s101_s21, 0 }
  0x1a   :  { %105 = shalt.err (%p144_p1)  }
  0x1b   :  { %107 = vsyncmov [#allocation2 + $0x1] }
  0x1e   :  { %s108_s22 = vpop.sfrf %107 }
  0x1f   :  { %p145_p2 = scmp.ne.s32.totalorder %s108_s22, 0 }
  0x21   :  { %112 = shalt.err (%p145_p2)  }

</bundles_post_ra>
